<compile_context>
chip_gen: v6e
topology: v6e:2x2x1
jax: 0.10.0
libtpu: 0.0.40
codegen_flags: <defaults>
</compile_context>

<pallas_src>
import functools

import numpy as np
import jax
import jax.numpy as jnp
from jax.experimental import pallas as pl
from jax.experimental.pallas import tpu as pltpu


# ---------------------------------------------------------------------------
# Hardware-aware configuration helpers.
# ---------------------------------------------------------------------------
def _vmem_config():
    """Return (adj pipeline depth, scoped VMEM cap bytes) for this TPU."""
    try:
        cap = int(pltpu.get_tpu_info().vmem_capacity_bytes)
    except Exception:
        cap = 64 << 20                      # unknown -> assume small (v7x-class)
    if cap <= (64 << 20):
        return 2, 48 << 20                  # v7x: 64 MiB/TC, leave headroom
    return 3, 100 << 20                     # v5e/v6e: 128 MiB, deeper adj pipe


def _compute_dtype():
    """bf16 elementwise math on chips with bf16 VPU/EUP (v6e+), else f32."""
    try:
        kind = jax.devices()[0].device_kind.lower()
    except Exception:
        return jnp.float32
    if any(v in kind for v in ("v2", "v3", "v4", "v5")):
        return jnp.float32
    return jnp.bfloat16


def _spec(block_shape, index_map, depth=None):
    """BlockSpec with an explicit pipeline depth when supported."""
    if depth is not None and hasattr(pl, "Buffered"):
        try:
            return pl.BlockSpec(block_shape, index_map,
                                pipeline_mode=pl.Buffered(depth))
        except TypeError:
            pass
    return pl.BlockSpec(block_shape, index_map)


_ROW_TILE_CANDIDATES = (2048, 1024, 512, 256, 128, 64, 32, 16)


def _pick_row_tile(n, per_row_bytes, budget_bytes, min_steps=4):
    """Largest row tile (multiple of 16, divides n) within budget_bytes,
    preferring tilings with >= min_steps grid steps (keeps both v7x
    TensorCores busy and improves DMA/compute overlap)."""
    cands = [c for c in _ROW_TILE_CANDIDATES if c <= n and n % c == 0]
    if not cands:
        return n                            # tiny/odd n: one full block
    for want_steps in (min_steps, 2, 1):
        for tm in cands:                    # descending
            if n // tm >= want_steps and tm * per_row_bytes <= budget_bytes:
                return tm
    return cands[-1]


# ---------------------------------------------------------------------------
# Kernel A: h = x @ W^T + b (f32); emit bf16 h and fused projections
#           f = h @ [v0 | v1] (f32).
# ---------------------------------------------------------------------------
def gat_precompute_kernel(x_ref, w_ref, b_ref, v01_ref, h_bf16_ref, f_ref):
    h = jnp.dot(x_ref[...], w_ref[...], preferred_element_type=jnp.float32)
    h = h + b_ref[...]                                   # (TMa, c_out) f32
    h_bf16_ref[...] = h.astype(jnp.bfloat16)             # cast once here
    f_ref[...] = jnp.dot(h, v01_ref[...], preferred_element_type=jnp.float32)


# ---------------------------------------------------------------------------
# Kernel B: row-tiled attention + masked "sparse" softmax + aggregation.
# ---------------------------------------------------------------------------
def gat_attention_kernel(adj_ref, haug_ref, f1_ref, f2t_ref, out_ref, *,
                         inv_temp, tm, c_out, compute_dtype):
    row0 = pl.multiple_of(pl.program_id(0) * tm, tm)

    adj = adj_ref[...].astype(compute_dtype)                  # (TM, N) streamed
    f1 = f1_ref[pl.ds(row0, tm), :].astype(compute_dtype)     # (TM, 1) resident
    f2t = f2t_ref[...].astype(compute_dtype)                  # (1, N)  resident

    logits = adj * (f1 + f2t)                                 # (TM, N)

    # sigmoid(x) - 0.5 == 0.5*tanh(0.5*x); tanh(0) == 0 exactly, so the
    # to_sparse() zero pattern (adj == 0 edges) is preserved.
    # TODO(synk): the reference sigmoid form also rounds |logit| < ~6e-8 on
    # live edges to exactly zero (and masks them); the tanh form keeps them.
    vals = 0.5 * jnp.tanh(0.5 * logits)
    mask = vals != 0.0

    z = vals * inv_temp
    # |vals| < 0.5  =>  |z| < 0.5*inv_temp; -2*inv_temp sits strictly below
    # every live entry, keeps fully-masked rows finite, and z - m <= 0
    # everywhere so exp never overflows.
    z_masked = jnp.where(mask, z, -2.0 * inv_temp)
    m = jnp.max(z_masked, axis=1, keepdims=True)
    e = jnp.where(mask, jnp.exp(z - m), 0.0)

    # One MXU call produces the weighted value aggregation AND (via the ones
    # column of haug) the softmax denominator, both with f32 accumulation.
    acc = jnp.dot(e.astype(jnp.bfloat16), haug_ref[...],
                  preferred_element_type=jnp.float32)          # (TM, c_out+1)
    s = acc[:, c_out:c_out + 1]                                # row sums (f32)
    s_safe = jnp.where(s > 0.0, s, 1.0)                        # edgeless -> 0
    out_ref[...] = acc[:, :c_out] * pl.reciprocal(s_safe, approx=True)


# ---------------------------------------------------------------------------
# Wrapper.
# ---------------------------------------------------------------------------
def gat_single_head(node_feats, adj_matrix, weight, bias, v0, v1, temp):
    """node_feats: (N, c_in), adj_matrix: (N, N) -> (N, c_out) float32."""
    n, c_in = node_feats.shape
    c_out = weight.shape[0]

    adj_depth, vmem_cap = _vmem_config()
    compute_dtype = _compute_dtype()
    csize = jnp.dtype(compute_dtype).itemsize

    x = node_feats.astype(jnp.float32)
    w_t = weight.T.astype(jnp.float32)                            # (c_in, c_out)
    b2d = bias.reshape(1, c_out).astype(jnp.float32)
    v01 = jnp.concatenate([v0, v1], axis=1).astype(jnp.float32)   # (c_out, 2)
    # bf16 adjacency stream: exact for 0/1 adjacency, halves the dominant
    # N^2 HBM traffic of kernel B on every TPU generation.
    adj = adj_matrix.astype(jnp.bfloat16)

    # ---- Kernel A: row-tiled precompute ----------------------------------
    per_row_a = (c_in * 4 * 2        # x tile (double buffered)
                 + c_out * 2 * 2     # h_bf16 out tile
                 + 2 * 4 * 2         # f out tile
                 + c_out * 4 * 2)    # f32 h intermediates
    tma = _pick_row_tile(n, per_row_a, budget_bytes=8 << 20, min_steps=4)
    a_weights = 2 * (c_in * c_out * 4 + c_out * 4 + c_out * 2 * 4)
    a_needed = tma * per_row_a + a_weights + (4 << 20)
    vmem_limit_a = int(min(max(a_needed, 16 << 20), vmem_cap))

    h_bf16, f = pl.pallas_call(
        gat_precompute_kernel,
        out_shape=(jax.ShapeDtypeStruct((n, c_out), jnp.bfloat16),
                   jax.ShapeDtypeStruct((n, 2), jnp.float32)),
        grid=(n // tma,),
        in_specs=[
            pl.BlockSpec((tma, c_in), lambda i: (i, 0)),
            _spec((c_in, c_out), lambda i: (0, 0), 1),
            _spec((1, c_out), lambda i: (0, 0), 1),
            _spec((c_out, 2), lambda i: (0, 0), 1),
        ],
        out_specs=(pl.BlockSpec((tma, c_out), lambda i: (i, 0)),
                   pl.BlockSpec((tma, 2), lambda i: (i, 0))),
        compiler_params=pltpu.CompilerParams(
            dimension_semantics=("parallel",),
            vmem_limit_bytes=vmem_limit_a,
        ),
    )(x, w_t, b2d, v01)

    f1 = f[:, 0:1]                                  # (N, 1) f32
    f2t = f[:, 1:2].reshape(1, n)                   # (1, N) f32
    # Ones column => kernel B's single MXU call also yields the softmax
    # row sums with f32 accumulation.
    h_aug = jnp.concatenate(
        [h_bf16, jnp.ones((n, 1), jnp.bfloat16)], axis=1)      # (N, c_out+1)

    # ---- Kernel B: row-streamed attention --------------------------------
    # TODO(synk): for very large N * c_out the resident h would need K-tiling.
    resident = 2 * (n * (c_out + 1) * 2 + n * 4 + n * 4)  # x2: Buffered(1) may
    per_row_b = (n * 2 * adj_depth        # adj stream (bf16) x pipeline depth
                 + 4 * n * csize + n      # elementwise/softmax intermediates
                 + c_out * 4 * 2)         # f32 out tile, double buffered
    headroom = 4 << 20
    budget = max(vmem_cap - resident - headroom, 2 << 20)
    tm = _pick_row_tile(n, per_row_b, budget_bytes=budget, min_steps=4)
    needed = resident + tm * per_row_b + headroom
    vmem_limit_b = int(min(max(needed, 32 << 20), vmem_cap))

    kernel = functools.partial(
        gat_attention_kernel,
        inv_temp=float(1.0 / temp), tm=tm, c_out=c_out,
        compute_dtype=compute_dtype)

    # TODO(synk): out stores are lane-masked when c_out < 128; pad h/out to
    # 128 lanes once the adjacency stream stops being the bottleneck.
    def _attention_call(use_pipeline_mode):
        d = (lambda k: k) if use_pipeline_mode else (lambda k: None)
        return pl.pallas_call(
            kernel,
            out_shape=jax.ShapeDtypeStruct((n, c_out), jnp.float32),
            grid=(n // tm,),
            in_specs=[
                _spec((tm, n), lambda i: (i, 0), d(adj_depth)),      # adj tile
                _spec((n, c_out + 1), lambda i: (0, 0), d(1)),       # h_aug
                _spec((n, 1), lambda i: (0, 0), d(1)),               # f1
                _spec((1, n), lambda i: (0, 0), d(1)),               # f2^T
            ],
            out_specs=pl.BlockSpec((tm, c_out), lambda i: (i, 0)),
            compiler_params=pltpu.CompilerParams(
                dimension_semantics=("parallel",),
                vmem_limit_bytes=vmem_limit_b,
            ),
        )(adj, h_aug, f1, f2t)

    try:
        return _attention_call(True)
    except Exception:
        # Fallback: default double-buffering everywhere (always supported).
        return _attention_call(False)


# ---------------------------------------------------------------------------
# Pure-JAX reference (mirrors the PyTorch forward, dense masked softmax).
# ---------------------------------------------------------------------------
def gat_reference(node_feats, adj, weight, bias, v0, v1, temp):
    h = node_feats @ weight.T + bias
    f1 = h @ v0
    f2 = h @ v1
    logits = adj * (f1 + f2.T)
    vals = jax.nn.sigmoid(logits) - 0.5
    mask = vals != 0.0
    z = vals / temp
    z_masked = jnp.where(mask, z, -jnp.inf)
    m = jnp.max(z_masked, axis=1, keepdims=True)
    m = jnp.where(jnp.isfinite(m), m, 0.0)
    e = jnp.where(mask, jnp.exp(z - m), 0.0)
    s = jnp.sum(e, axis=1, keepdims=True)
    probs = jnp.where(s > 0.0, e / jnp.where(s > 0.0, s, 1.0), 0.0)
    return probs @ h


def init_params(key, c_in, c_out):
    k1, k2, k3 = jax.random.split(key, 3)
    lim_w = np.sqrt(6.0 / (c_in + c_out))
    lim_v = np.sqrt(6.0 / (c_out + 1))
    weight = jax.random.uniform(k1, (c_out, c_in), jnp.float32, -lim_w, lim_w)
    bias = jnp.zeros((c_out,), jnp.float32)
    v0 = jax.random.uniform(k2, (c_out, 1), jnp.float32, -lim_v, lim_v)
    v1 = jax.random.uniform(k3, (c_out, 1), jnp.float32, -lim_v, lim_v)
    return weight, bias, v0, v1


if __name__ == "__main__":
    def run_case(n, c_in, c_out, temp):
        key = jax.random.PRNGKey(0)
        k_x, k_adj, k_p = jax.random.split(key, 3)
        node_feats = jax.random.normal(k_x, (n, c_in), jnp.float32)
        # Dense 0/1 adjacency with zeros, self-loops included.
        adj = (jax.random.uniform(k_adj, (n, n)) > 0.5).astype(jnp.float32)
        adj = jnp.maximum(adj, jnp.eye(n, dtype=jnp.float32))
        weight, bias, v0, v1 = init_params(k_p, c_in, c_out)

        out = gat_single_head(node_feats, adj, weight, bias, v0, v1, temp)
        jax.block_until_ready(out)

        ref = gat_reference(node_feats, adj, weight, bias, v0, v1, temp)
        assert out.shape == (n, c_out)
        assert bool(jnp.all(jnp.isfinite(out)))
        max_err = float(jnp.max(jnp.abs(out - ref)))
        assert max_err < 5e-2, f"max abs err {max_err} (n={n})"

    run_case(16, 8, 32, 1.0)    # single-tile path
    run_case(64, 16, 32, 0.5)   # multi-tile path (grid of 4 row tiles)
    print("KERNEL_OK")
</pallas_src>

<mosaic_0001>
module attributes {stable_mosaic.version = 11 : i64} {
  func.func @gat_precompute_kernel(%arg0: i32, %arg1: memref<16x8xf32, #tpu.memory_space<vmem>>, %arg2: memref<8x32xf32, #tpu.memory_space<vmem>>, %arg3: memref<1x32xf32, #tpu.memory_space<vmem>>, %arg4: memref<32x2xf32, #tpu.memory_space<vmem>>, %arg5: memref<16x32xbf16, #tpu.memory_space<vmem>>, %arg6: memref<16x2xf32, #tpu.memory_space<vmem>>) attributes {dimension_semantics = [#tpu.dimension_semantics<parallel>], iteration_bounds = array<i64: 1>, scalar_prefetch = 0 : i64, scratch_operands = 0 : i64, tpu.core_type = #tpu.core_type<tc>, window_params = [{transform_indices = @transform_0, window_bounds = array<i64: 16, 8>}, {pipeline_mode = #tpu.pipeline_mode<synchronous>, transform_indices = @transform_1, window_bounds = array<i64: 8, 32>}, {pipeline_mode = #tpu.pipeline_mode<synchronous>, transform_indices = @transform_2, window_bounds = array<i64: 1, 32>}, {pipeline_mode = #tpu.pipeline_mode<synchronous>, transform_indices = @transform_3, window_bounds = array<i64: 32, 2>}, {transform_indices = @transform_4, window_bounds = array<i64: 16, 32>}, {transform_indices = @transform_5, window_bounds = array<i64: 16, 2>}]} {
    %c0 = arith.constant 0 : index
    %c0_0 = arith.constant 0 : index
    %0 = vector.load %arg1[%c0, %c0_0] : memref<16x8xf32, #tpu.memory_space<vmem>>, vector<16x8xf32>
    %c0_1 = arith.constant 0 : index
    %c0_2 = arith.constant 0 : index
    %1 = vector.load %arg2[%c0_1, %c0_2] : memref<8x32xf32, #tpu.memory_space<vmem>>, vector<8x32xf32>
    %cst = arith.constant dense<0.000000e+00> : vector<16x32xf32>
    %2 = tpu.matmul %0, %1, %cst {dimension_numbers = #tpu.dot_dimension_numbers<[1], [0], [0], [1], [0, 0, 1, 1], [], []>} : vector<16x8xf32>, vector<8x32xf32>, vector<16x32xf32> -> vector<16x32xf32>
    %c0_3 = arith.constant 0 : index
    %c0_4 = arith.constant 0 : index
    %3 = vector.load %arg3[%c0_3, %c0_4] : memref<1x32xf32, #tpu.memory_space<vmem>>, vector<1x32xf32>
    %4 = vector.broadcast %3 : vector<1x32xf32> to vector<16x32xf32>
    %5 = arith.addf %2, %4 : vector<16x32xf32>
    %6 = arith.truncf %5 : vector<16x32xf32> to vector<16x32xbf16>
    %c0_5 = arith.constant 0 : index
    %c0_6 = arith.constant 0 : index
    %7 = vector.load %arg5[%c0_5, %c0_6] : memref<16x32xbf16, #tpu.memory_space<vmem>>, vector<16x32xbf16>
    tpu.vector_store %arg5[%c0_5, %c0_6], %6 {strides = array<i32>} : memref<16x32xbf16, #tpu.memory_space<vmem>>, vector<16x32xbf16>,
    %c0_7 = arith.constant 0 : index
    %c0_8 = arith.constant 0 : index
    %8 = vector.load %arg4[%c0_7, %c0_8] : memref<32x2xf32, #tpu.memory_space<vmem>>, vector<32x2xf32>
    %cst_9 = arith.constant dense<0.000000e+00> : vector<16x2xf32>
    %9 = tpu.matmul %5, %8, %cst_9 {dimension_numbers = #tpu.dot_dimension_numbers<[1], [0], [0], [1], [0, 0, 1, 1], [], []>} : vector<16x32xf32>, vector<32x2xf32>, vector<16x2xf32> -> vector<16x2xf32>
    %c0_10 = arith.constant 0 : index
    %c0_11 = arith.constant 0 : index
    %10 = vector.load %arg6[%c0_10, %c0_11] : memref<16x2xf32, #tpu.memory_space<vmem>>, vector<16x2xf32>
    tpu.vector_store %arg6[%c0_10, %c0_11], %9 {strides = array<i32>} : memref<16x2xf32, #tpu.memory_space<vmem>>, vector<16x2xf32>,
    return
  }
  func.func @transform_0(%arg0: i32) -> (i32, i32) {
    %c0_i32 = arith.constant 0 : i32
    %c0_i32_0 = arith.constant 0 : i32
    return %arg0, %c0_i32 : i32, i32
  }
  func.func @transform_1(%arg0: i32) -> (i32, i32) {
    %c0_i32 = arith.constant 0 : i32
    %c0_i32_0 = arith.constant 0 : i32
    %c0_i32_1 = arith.constant 0 : i32
    return %c0_i32, %c0_i32_0 : i32, i32
  }
  func.func @transform_2(%arg0: i32) -> (i32, i32) {
    %c0_i32 = arith.constant 0 : i32
    %c0_i32_0 = arith.constant 0 : i32
    %c0_i32_1 = arith.constant 0 : i32
    return %c0_i32, %c0_i32_0 : i32, i32
  }
  func.func @transform_3(%arg0: i32) -> (i32, i32) {
    %c0_i32 = arith.constant 0 : i32
    %c0_i32_0 = arith.constant 0 : i32
    %c0_i32_1 = arith.constant 0 : i32
    return %c0_i32, %c0_i32_0 : i32, i32
  }
  func.func @transform_4(%arg0: i32) -> (i32, i32) {
    %c0_i32 = arith.constant 0 : i32
    %c0_i32_0 = arith.constant 0 : i32
    return %arg0, %c0_i32 : i32, i32
  }
  func.func @transform_5(%arg0: i32) -> (i32, i32) {
    %c0_i32 = arith.constant 0 : i32
    %c0_i32_0 = arith.constant 0 : i32
    return %arg0, %c0_i32 : i32, i32
  }
}

</mosaic_0001>

<bundles_post_ra>
// kernel: tpu_custom_call.1
= control target key start
LH: loop header
LB: loop body
LE: loop exit
PB: predicated region body
PF: predicated region fallthrough
CT: control target
= control target key end

     0   :  { %vm30_vm0 = vcmask 64512   ;;  %s357_s0 = inlined_call_operand.vmem [shape: f32[16,8], index: 0, kind: input, shape index: {}]   ;;  %s358_s1 = inlined_call_operand.vmem [shape: f32[8,32], index: 1, kind: input, shape index: {}]   ;;  %s359_s2 = inlined_call_operand.vmem [shape: f32[1,32], index: 2, kind: input, shape index: {}]   ;;  %s360_s3 = inlined_call_operand.vmem [shape: f32[32,2], index: 3, kind: input, shape index: {}]   ;;  %s361_s4 = inlined_call_operand.hbm [shape: bf16[16,32], index: 4, kind: output, shape index: {0}]   ;;  %s362_s5 = inlined_call_operand.vmem [shape: f32[16,2], index: 5, kind: output, shape index: {1}]  }
   0x1   :  { %v22_v0 = vld [vmem:[%s358_s1] sm:$0xff]  ;;  %v21_v2 = vld [vmem:[%s357_s0 + $0x8] sm:$0xff]  ;;  %v126_v3 = vld [vmem:[%s360_s3 + $0x18] sm:$0xff] }
   0x2   :  { %v20_v1 = vld [vmem:[%s357_s0] sm:$0xff]  ;;  %250 = vmatprep.subr.mxu0 %v22_v0 }
   0x3   :  { %252 = vmatprep.mubr.msk.f32.mxu0 %vm30_vm0, %v20_v1 }
   0x4   :  { %11 = vsyncpa [#allocation3], 0  ;;  %251 = vmatpush3.msra.mxu0 %v22_v0  ;;  %255 = vmatprep.subr.mxu1 %v126_v3  ;;  %v125_v4 = vld [vmem:[%s360_s3 + $0x10] sm:$0xff]  ;;  %v124_v5 = vld [vmem:[%s360_s3 + $0x8] sm:$0xff]  ;;  %vm120_vm1 = vcmask 257024   ;;  %vm127_vm2 = vcmask 261120  }
   0x5   :  { %253 = vmatmul.mubr.msk.f32.vlgmr.msra.gmra.mxu0 %vm30_vm0, %v21_v2  ;;  %256 = vmatpush3.msra.mxu1 %v126_v3  ;;  %v123_v6 = vld [vmem:[%s360_s3] sm:$0xff]  ;;  %s291_s7 = smov [#allocation2]  }
   0x6   :  { %257 = vmatprep.subr.mxu1 %v125_v4  ;;  %v232_v7 = vld [vmem:[%s359_s2] ss:$0 sm:$0xff]  ;;  %s217_s3 = sshll.u32 %s291_s7, 4  ;;  %s218_s3 = int_to_ptr.vmem [resolvable:$true] %s217_s3 }
   0x7   :  { %258 = vmatpush3.msra.mxu1 %v125_v4  ;;  %s269_s8 = scalar_lea.vmem %s218_s3, 128  ;;  %p274_p1 = scmp.lt.s32.totalorder %s218_s3, %s218_s3 }
   0x8   :  { %259 = vmatprep.subr.mxu1 %v124_v5  ;;  %p270_p0 = scmp.ne.s32.totalorder %s218_s3, %s269_s8  ;;  %p275_p2 = scmp.lt.s32.totalorder %s269_s8, %s269_s8 }
   0x9   :  { %260 = vmatpush3.msra.mxu1 %v124_v5 }
   0xa   :  { %261 = vmatprep.subr.mxu1 %v123_v6  ;;  %p276_p3 = por %p275_p2, %p274_p1 }
   0xb   :  { %262 = vmatpush3.msra.mxu1 %v123_v6 }
   0xc   :  { %p277_p4 = pnand %p276_p3, %p270_p0 }
  0xc5   :  { %v254_v8 = vpop.f32.mrf.mxu0 }
  0xc6   :  { %v109_v9 = vadd.f32 %v254_v8, %v232_v7 }
  0xc7   :  { %v103_v10 = vpop.f32.mrf.mxu0 }
  0xc8   :  { %v240_v11 = vpack.c.bf16 %v109_v9, %v109_v9  ;;  %v104_v12 = vadd.f32 %v232_v7, %v103_v10 }
  0xca   :  { %122 = vst.msk [vmem:[#allocation2 + $0x4] sm:$0xf] %vm120_vm1, %v240_v11  ;;  %v239_v13 = vpack.c.bf16 %v104_v12, %v104_v12  ;;  %263 = vmatprep.mubr.msk.f32.mxu1 %vm127_vm2, %v104_v12 }
  0xcb   :  { %264 = vmatmul.mubr.msk.f32.vlgmr.msra.gmra.mxu1 %vm127_vm2, %v109_v9 }
  0xcc   :  { %121 = vst.msk [vmem:[#allocation2] sm:$0xf] %vm120_vm1, %v239_v13 }
  0xcd   :  { %280 = shalt.err (!%p277_p4)
}
  0xce   :  { %s292_s2 = smov 64   ;;  %s293_s9 = smov 4   ;;  %vm209_vm3 = vcmask 15360  }
  0xcf   :  { %223 = dma.vmem_to_hbm [thread:$0]  %s218_s3, 128, %s361_s4, [#allocation3], %s292_s2, %s292_s2, %s293_s9  }
 0x18b   :  { %v265_v14 = vpop.f32.mrf.mxu1 }
 0x18c   :  { %211 = vst.msk [vmem:[%s362_s5 + $0x8] sm:$0xff] %vm209_vm3, %v265_v14 }
 0x18d   :  { %v200_v15 = vpop.f32.mrf.mxu1 }
 0x18e   :  { %210 = vst.msk [vmem:[%s362_s5] sm:$0xff] %vm209_vm3, %v200_v15 }
 0x18f   :  { %289 = dma.done.wait [#allocation3], 128  }
 0x190   :  { %290 = vsyncadd [#allocation3], 4294967168 }
 0x191   :  { %231 = vsyncpa [#allocation3], 1 }

</bundles_post_ra>
